<compile_context>
chip_gen: v5e
topology: v5e:2x2
jax: 0.10.0
libtpu: 0.0.40
codegen_flags: <defaults>
</compile_context>

<pallas_src>
import math

import jax
import jax.numpy as jnp
from jax.experimental import pallas as pl
from jax.experimental.pallas import tpu as pltpu


def _round_up(n: int, m: int) -> int:
    return ((n + m - 1) // m) * m


def _pos_enc_kernel(x_ref, plen_ref, div_ref, phase_ref, o_ref):
    # x_ref:     (tile_rows, F*D)  folded rows-into-lanes view of x
    # plen_ref:  (tile_rows, F)    one path_len value per original row
    # div_ref:   (1, F*D)          per-column frequency, tiled F times (resident)
    # phase_ref: (1, F*D)          0 for even columns, pi/2 for odd columns (resident)
    # o_ref:     (tile_rows, F*D)
    tile_rows, fd = x_ref.shape
    f = plen_ref.shape[1]
    d = fd // f

    # Broadcast each original row's path_len across that row's d lanes.
    if f == 1:
        plen_b = jnp.broadcast_to(plen_ref[...], (tile_rows, fd))
    else:
        parts = [jnp.broadcast_to(plen_ref[:, j:j + 1], (tile_rows, d))
                 for j in range(f)]
        plen_b = jnp.concatenate(parts, axis=-1)

    # sin(a + pi/2) == cos(a): single transcendental per element.
    angle = plen_b * div_ref[...] + phase_ref[...]
    o_ref[...] = x_ref[...] + jnp.sin(angle).astype(o_ref.dtype)


def positional_encoding(x: jax.Array, path_len: jax.Array,
                        *, tile_bytes: int = 1 << 20) -> jax.Array:
    """x: [num_edges, d_model] float32, path_len: [num_edges] (any numeric dtype)."""
    num_edges, d_model = x.shape

    # Fold F consecutive rows into the lane axis so the folded width is a
    # multiple of 128 (F == 1 when d_model is already a multiple of 128).
    fold = math.lcm(d_model, 128) // d_model
    fd = fold * d_model

    # Hoisted per-column constants (frequency and sin/cos phase), tiled across the fold.
    col = jnp.arange(d_model)
    base = (col // 2) * 2
    div_term = jnp.exp(base.astype(jnp.float32) *
                       jnp.float32(-math.log(10000.0) / d_model))
    phase = jnp.where(col % 2 == 0, 0.0, math.pi / 2.0).astype(jnp.float32)
    div_f = jnp.tile(div_term, fold).reshape(1, fd)
    phase_f = jnp.tile(phase, fold).reshape(1, fd)

    # Tile sizing: largest row-tile within ~tile_bytes of x per step (multiple of 8).
    rows = pl.cdiv(num_edges, fold)
    budget_rows = max(8, (tile_bytes // (fd * 4)) // 8 * 8)
    tile_rows = min(budget_rows, _round_up(rows, 8))
    rows_pad = _round_up(rows, tile_rows)
    edges_pad = rows_pad * fold

    plen = path_len.astype(jnp.float32)
    if edges_pad != num_edges:
        x_in = jnp.pad(x, ((0, edges_pad - num_edges), (0, 0)))
        plen = jnp.pad(plen, (0, edges_pad - num_edges))
    else:
        x_in = x
    x_f = x_in.reshape(rows_pad, fd)       # same memory order, lane-dense view
    plen_f = plen.reshape(rows_pad, fold)

    grid = (rows_pad // tile_rows,)
    out = pl.pallas_call(
        _pos_enc_kernel,
        out_shape=jax.ShapeDtypeStruct((rows_pad, fd), x.dtype),
        grid_spec=pltpu.PrefetchScalarGridSpec(
            num_scalar_prefetch=0,
            grid=grid,
            in_specs=[
                pl.BlockSpec((tile_rows, fd), lambda i: (i, 0)),
                pl.BlockSpec((tile_rows, fold), lambda i: (i, 0)),
                pl.BlockSpec((1, fd), lambda i: (0, 0)),   # resident constants
                pl.BlockSpec((1, fd), lambda i: (0, 0)),   # resident constants
            ],
            out_specs=pl.BlockSpec((tile_rows, fd), lambda i: (i, 0)),
        ),
        compiler_params=pltpu.CompilerParams(
            dimension_semantics=("parallel",),
            vmem_limit_bytes=32 * 1024 * 1024,
        ),
    )(x_f, plen_f, div_f, phase_f)

    out = out.reshape(edges_pad, d_model)
    if edges_pad != num_edges:
        out = out[:num_edges]
    return out


def _reference(x, path_len):
    """Pure-JAX reference mirroring the PyTorch loop exactly (sin/cos selection)."""
    num_edges, d_model = x.shape
    i = jnp.arange(d_model)
    base_idx = (i // 2) * 2
    div_term = jnp.exp(base_idx.astype(jnp.float32) * (-math.log(10000.0) / d_model))
    angle = path_len.astype(jnp.float32)[:, None] * div_term[None, :]
    pe = jnp.where(i % 2 == 0, jnp.sin(angle), jnp.cos(angle))
    return x + pe.astype(x.dtype)


if __name__ == "__main__":
    key = jax.random.PRNGKey(0)
    kx, kp = jax.random.split(key)

    # Shapes matching the module's forward: x [num_edges, d_model], path_len [num_edges].
    num_edges, d_model = 128, 32
    x = jax.random.normal(kx, (num_edges, d_model), dtype=jnp.float32)
    path_len = jax.random.randint(kp, (num_edges,), 1, 17).astype(jnp.float32)

    out = jax.block_until_ready(positional_encoding(x, path_len))
    ref = _reference(x, path_len)
    assert out.shape == x.shape and out.dtype == x.dtype
    assert jnp.allclose(out, ref, atol=2e-5, rtol=1e-5), "mismatch vs reference"

    # Ragged edge count (exercises the padding path instead of the old hard assert).
    x2 = jax.random.normal(kx, (100, d_model), dtype=jnp.float32)
    p2 = jax.random.randint(kp, (100,), 1, 17).astype(jnp.float32)
    out2 = jax.block_until_ready(positional_encoding(x2, p2))
    ref2 = _reference(x2, p2)
    assert out2.shape == x2.shape
    assert jnp.allclose(out2, ref2, atol=2e-5, rtol=1e-5), "mismatch vs reference (ragged)"

    print("KERNEL_OK")
</pallas_src>

<mosaic_0001>
module attributes {stable_mosaic.version = 11 : i64} {
  func.func @_pos_enc_kernel(%arg0: i32, %arg1: memref<32x128xf32, #tpu.memory_space<vmem>>, %arg2: memref<32x4xf32, #tpu.memory_space<vmem>>, %arg3: memref<1x128xf32, #tpu.memory_space<vmem>>, %arg4: memref<1x128xf32, #tpu.memory_space<vmem>>, %arg5: memref<32x128xf32, #tpu.memory_space<vmem>>) attributes {dimension_semantics = [#tpu.dimension_semantics<parallel>], iteration_bounds = array<i64: 1>, scalar_prefetch = 0 : i64, scratch_operands = 0 : i64, tpu.core_type = #tpu.core_type<tc>, window_params = [{transform_indices = @transform_0, window_bounds = array<i64: 32, 128>}, {transform_indices = @transform_1, window_bounds = array<i64: 32, 4>}, {pipeline_mode = #tpu.pipeline_mode<synchronous>, transform_indices = @transform_2, window_bounds = array<i64: 1, 128>}, {pipeline_mode = #tpu.pipeline_mode<synchronous>, transform_indices = @transform_3, window_bounds = array<i64: 1, 128>}, {transform_indices = @transform_4, window_bounds = array<i64: 32, 128>}]} {
    %c0 = arith.constant 0 : index
    %c0_0 = arith.constant 0 : index
    %0 = vector.load %arg2[%c0, %c0_0] : memref<32x4xf32, #tpu.memory_space<vmem>>, vector<32x1xf32>
    %1 = vector.shape_cast %0 : vector<32x1xf32> to vector<32x1xf32>
    %2 = vector.broadcast %1 : vector<32x1xf32> to vector<32x32xf32>
    %c0_1 = arith.constant 0 : index
    %c1 = arith.constant 1 : index
    %3 = vector.load %arg2[%c0_1, %c1] : memref<32x4xf32, #tpu.memory_space<vmem>>, vector<32x1xf32>
    %4 = vector.shape_cast %3 : vector<32x1xf32> to vector<32x1xf32>
    %5 = vector.broadcast %4 : vector<32x1xf32> to vector<32x32xf32>
    %c0_2 = arith.constant 0 : index
    %c2 = arith.constant 2 : index
    %6 = vector.load %arg2[%c0_2, %c2] : memref<32x4xf32, #tpu.memory_space<vmem>>, vector<32x1xf32>
    %7 = vector.shape_cast %6 : vector<32x1xf32> to vector<32x1xf32>
    %8 = vector.broadcast %7 : vector<32x1xf32> to vector<32x32xf32>
    %c0_3 = arith.constant 0 : index
    %c3 = arith.constant 3 : index
    %9 = vector.load %arg2[%c0_3, %c3] : memref<32x4xf32, #tpu.memory_space<vmem>>, vector<32x1xf32>
    %10 = vector.shape_cast %9 : vector<32x1xf32> to vector<32x1xf32>
    %11 = vector.broadcast %10 : vector<32x1xf32> to vector<32x32xf32>
    %12 = tpu.concatenate %2, %5, %8, %11 in 1 : vector<32x32xf32>, vector<32x32xf32>, vector<32x32xf32>, vector<32x32xf32> -> vector<32x128xf32>
    %c0_4 = arith.constant 0 : index
    %c0_5 = arith.constant 0 : index
    %13 = vector.load %arg3[%c0_4, %c0_5] : memref<1x128xf32, #tpu.memory_space<vmem>>, vector<1x128xf32>
    %14 = vector.broadcast %13 : vector<1x128xf32> to vector<32x128xf32>
    %15 = arith.mulf %12, %14 : vector<32x128xf32>
    %c0_6 = arith.constant 0 : index
    %c0_7 = arith.constant 0 : index
    %16 = vector.load %arg4[%c0_6, %c0_7] : memref<1x128xf32, #tpu.memory_space<vmem>>, vector<1x128xf32>
    %17 = vector.broadcast %16 : vector<1x128xf32> to vector<32x128xf32>
    %18 = arith.addf %15, %17 : vector<32x128xf32>
    %c0_8 = arith.constant 0 : index
    %c0_9 = arith.constant 0 : index
    %19 = vector.load %arg1[%c0_8, %c0_9] : memref<32x128xf32, #tpu.memory_space<vmem>>, vector<32x128xf32>
    %20 = math.sin %18 : vector<32x128xf32>
    %21 = arith.addf %19, %20 : vector<32x128xf32>
    %c0_10 = arith.constant 0 : index
    %c0_11 = arith.constant 0 : index
    %22 = vector.load %arg5[%c0_10, %c0_11] : memref<32x128xf32, #tpu.memory_space<vmem>>, vector<32x128xf32>
    tpu.vector_store %arg5[%c0_10, %c0_11], %21 {strides = array<i32>} : memref<32x128xf32, #tpu.memory_space<vmem>>, vector<32x128xf32>,
    return
  }
  func.func @transform_0(%arg0: i32) -> (i32, i32) {
    %c0_i32 = arith.constant 0 : i32
    %c0_i32_0 = arith.constant 0 : i32
    return %arg0, %c0_i32 : i32, i32
  }
  func.func @transform_1(%arg0: i32) -> (i32, i32) {
    %c0_i32 = arith.constant 0 : i32
    %c0_i32_0 = arith.constant 0 : i32
    return %arg0, %c0_i32 : i32, i32
  }
  func.func @transform_2(%arg0: i32) -> (i32, i32) {
    %c0_i32 = arith.constant 0 : i32
    %c0_i32_0 = arith.constant 0 : i32
    %c0_i32_1 = arith.constant 0 : i32
    return %c0_i32, %c0_i32_0 : i32, i32
  }
  func.func @transform_3(%arg0: i32) -> (i32, i32) {
    %c0_i32 = arith.constant 0 : i32
    %c0_i32_0 = arith.constant 0 : i32
    %c0_i32_1 = arith.constant 0 : i32
    return %c0_i32, %c0_i32_0 : i32, i32
  }
  func.func @transform_4(%arg0: i32) -> (i32, i32) {
    %c0_i32 = arith.constant 0 : i32
    %c0_i32_0 = arith.constant 0 : i32
    return %arg0, %c0_i32 : i32, i32
  }
}

</mosaic_0001>

<bundles_post_ra>
// kernel: tpu_custom_call.1
= control target key start
LH: loop header
LB: loop body
LE: loop exit
PB: predicated region body
PF: predicated region fallthrough
CT: control target
= control target key end

     0   :  { %v835_v2 = vmov 0   ;;  %s1350_s0 = inlined_call_operand.vmem [shape: f32[32,128], index: 0, kind: input, shape index: {}]   ;;  %s1351_s1 = inlined_call_operand.vmem [shape: f32[32,4], index: 1, kind: input, shape index: {}]   ;;  %s1352_s2 = inlined_call_operand.vmem [shape: f32[1,128], index: 2, kind: input, shape index: {}]   ;;  %s1353_s3 = inlined_call_operand.vmem [shape: f32[1,128], index: 3, kind: input, shape index: {}]   ;;  %s1354_s4 = inlined_call_operand.hbm [shape: f32[32,128], index: 4, kind: output, shape index: {}]  }
   0x1   :  { %v20_v0 = vld [vmem:[%s1351_s1 + $0x10] sm:$0xff]  ;;  %v18_v1 = vld [vmem:[%s1351_s1] sm:$0xff]  ;;  %797 = vset.pattern.permute.xlu1 %v835_v2  ;;  %796 = vset.pattern.permute.xlu0 %v835_v2 }
   0x2   :  { %34 = vperm.xlu1 %797, %v20_v0   ;;  %24 = vperm.xlu0 %796, %v18_v1  }
   0x3   :  { %9 = vsyncpa [#allocation3], 0  ;;  %v836_v3 = vmov 1   ;;  %v21_v4 = vld [vmem:[%s1351_s1 + $0x18] sm:$0xff]  ;;  %v19_v5 = vld [vmem:[%s1351_s1 + $0x8] sm:$0xff]  ;;  %v837_v6 = vmov 2  }
   0x4   :  { %798 = vset.pattern.permute.xlu2 %v836_v3  ;;  %v838_v7 = vmov 3   ;;  %vm90_vm0 = vcmask 261120   ;;  %vm100_vm1 = vcmask 785408   ;;  %v895_v20 = vld [vmem:[%s1352_s2] ss:$0 sm:$0xff]  ;;  %vm95_vm2 = vcmask 523264  }
   0x5   :  { %43 = vperm.xlu2 %798, %v18_v1   ;;  %v902_v26 = vld [vmem:[%s1353_s3] ss:$0 sm:$0xff]  ;;  %s845_s30 = smov [#allocation2]   ;;  %s759_s8 = sshll.u32 %s1354_s4, 4  ;;  %s760_s8 = int_to_ptr.hbm [resolvable:$true] %s759_s8 }
   0x6   :  { %s757_s5 = sshll.u32 %s845_s30, 4  ;;  %s846_s11 = smov 128   ;;  %s758_s5 = int_to_ptr.vmem [resolvable:$true] %s757_s5 }
   0x7   :  { %s847_s12 = smov 8  }
   0xa   :  { %39 = vperm.xlu1 %797, %v21_v4   ;;  %29 = vperm.xlu0 %796, %v19_v5  }
   0xd   :  { %47 = vperm.xlu2 %798, %v19_v5  }
  0x12   :  { %800 = vset.pattern.permute.xlu1 %v836_v3  ;;  %799 = vset.pattern.permute.xlu0 %v836_v3 }
  0x13   :  { %55 = vperm.xlu1 %800, %v21_v4   ;;  %51 = vperm.xlu0 %799, %v20_v0  }
  0x15   :  { %801 = vset.pattern.permute.xlu2 %v837_v6 }
  0x16   :  { %59 = vperm.xlu2 %801, %v18_v1  }
  0x1b   :  { %802 = vset.pattern.permute.xlu1 %v837_v6  ;;  %803 = vset.pattern.permute.xlu0 %v837_v6 }
  0x1c   :  { %63 = vperm.xlu1 %802, %v19_v5   ;;  %71 = vperm.xlu0 %803, %v21_v4  }
  0x1e   :  { %67 = vperm.xlu2 %801, %v20_v0  }
  0x24   :  { %804 = vset.pattern.permute.xlu1 %v838_v7  ;;  %806 = vset.pattern.permute.xlu0 %v838_v7 }
  0x25   :  { %75 = vperm.xlu1 %804, %v18_v1   ;;  %v839_v1 = vmov 683565275  }
  0x26   :  { %805 = vset.pattern.permute.xlu2 %v838_v7 }
  0x27   :  { %79 = vperm.xlu2 %805, %v19_v5  }
  0x2d   :  { %83 = vperm.xlu1 %804, %v20_v0  }
  0x2f   :  { %87 = vperm.xlu2 %805, %v21_v4   ;;  %v840_v4 = vmov 2475754826  }
  0x5f   :  { %v44_v8 = vpop.permute.xlu2 %43 }
  0x67   :  { %v48_v9 = vpop.permute.xlu2 %47 }
  0x70   :  { %v60_v10 = vpop.permute.xlu2 %59 }
  0x74   :  { %v35_v11 = vpop.permute.xlu1 %34  ;;  %v25_v12 = vpop.permute.xlu0 %24 }
  0x75   :  { %v91_v35 = vsel %vm90_vm0, %v25_v12, %v44_v8  ;;  %v841_v8 = vmov 2131351028  }
  0x76   :  { %v96_v43 = vsel %vm95_vm2, %v91_v35, %v60_v10 }
  0x78   :  { %v887_v13 = vpop.permute.xlu2 %67 }
  0x7c   :  { %v40_v14 = vpop.permute.xlu1 %39  ;;  %v30_v15 = vpop.permute.xlu0 %29 }
  0x7d   :  { %v92_v22 = vsel %vm90_vm0, %v30_v15, %v48_v9  ;;  %v843_v15 = vmov 920167782  }
  0x81   :  { %v80_v16 = vpop.permute.xlu2 %79 }
  0x85   :  { %v56_v17 = vpop.permute.xlu1 %55  ;;  %v52_v18 = vpop.permute.xlu0 %51 }
  0x86   :  { %v890_v19 = vsel %vm90_vm0, %v35_v11, %v52_v18  ;;  %v94_v23 = vsel %vm90_vm0, %v40_v14, %v56_v17  ;;  %v842_v11 = vmov 2102212464   ;;  %v844_v18 = vmov 1326507024  }
  0x89   :  { %v88_v21 = vpop.permute.xlu2 %87 }
  0x8e   :  { %v64_v24 = vpop.permute.xlu1 %63  ;;  %v72_v25 = vpop.permute.xlu0 %71 }
  0x8f   :  { %v97_v27 = vsel %vm95_vm2, %v92_v22, %v64_v24  ;;  %v99_v28 = vsel %vm95_vm2, %v94_v23, %v72_v25 }
  0x90   :  { %v102_v29 = vsel %vm100_vm1, %v97_v27, %v80_v16  ;;  %v104_v30 = vsel %vm100_vm1, %v99_v28, %v88_v21 }
  0x91   :  { %v110_v31 = vmul.f32 %v895_v20, %v102_v29  ;;  %v112_v32 = vmul.f32 %v895_v20, %v104_v30 }
  0x93   :  { %v911_v33 = vadd.f32 %v902_v26, %v110_v31  ;;  %v914_v34 = vadd.f32 %v902_v26, %v112_v32 }
  0x95   :  { %v280_v36 = vand.u32 2147483647, %v911_v33  ;;  %v283_v37 = vand.u32 2139095040, %v911_v33  ;;  %v590_v38 = vand.u32 2147483647, %v914_v34  ;;  %v593_v39 = vand.u32 2139095040, %v914_v34 }
  0x97   :  { %v284_v40 = vshrl.u32 %v283_v37, 23  ;;  %v287_v41 = vand.u32 8388607, %v280_v36  ;;  %v76_v42 = vpop.permute.xlu1 %75  ;;  %v594_v44 = vshrl.u32 %v593_v39, 23  ;;  %v597_v45 = vand.u32 8388607, %v590_v38 }
  0x98   :  { %v101_v48 = vsel %vm100_vm1, %v96_v43, %v76_v42 }
  0x99   :  { %v774_v46 = vadd.s32 4294967169, %v284_v40  ;;  %v288_v47 = vor.u32 8388608, %v287_v41  ;;  %v780_v49 = vadd.s32 4294967169, %v594_v44  ;;  %v598_v50 = vor.u32 8388608, %v597_v45 }
  0x9a   :  { %v109_v53 = vmul.f32 %v895_v20, %v101_v48 }
  0x9b   :  { %v290_v51 = vadd.s32 1, %v774_v46  ;;  %v600_v52 = vadd.s32 1, %v780_v49  ;;  %v928_v54 = vshll.u32 %v288_v47, 8  ;;  %v930_v56 = vshll.u32 %v598_v50, 8 }
  0x9c   :  { %v933_v59 = vadd.f32 %v902_v26, %v109_v53 }
  0x9d   :  { %vm291_vm3 = vcmp.gt.s32.totalorder %v290_v51, 0  ;;  %vm601_vm4 = vcmp.gt.s32.totalorder %v600_v52, 0  ;;  %v936_v61 = vand.u32 65535, %v928_v54  ;;  %v939_v62 = vshrl.u32 %v928_v54, 16 }
  0x9e   :  { %v292_v55 = vsel %vm291_vm3, %v290_v51, 0  ;;  %v602_v58 = vsel %vm601_vm4, %v600_v52, 0  ;;  %v948_v6 = vand.u32 65535, %v930_v56 }
  0x9f   :  { %v294_v57 = vand.u32 31, %v292_v55  ;;  %v941_v63 = vand.u32 31, %v602_v58  ;;  %v943_v0 = vshrl.u32 %v292_v55, 5  ;;  %v990_v53 = vshrl.u32 %v602_v58, 5 }
  0xa1   :  { %v295_v60 = vsub.s32 32, %v294_v57  ;;  %v297_v3 = vshll.u32 %v839_v1, %v294_v57  ;;  %v300_v5 = vshll.u32 %v840_v4, %v294_v57  ;;  %v303_v10 = vshll.u32 %v841_v8, %v294_v57 }
  0xa2   :  { %v306_v14 = vshll.u32 %v842_v11, %v294_v57  ;;  %v309_v17 = vshll.u32 %v843_v15, %v294_v57  ;;  %v959_v25 = vsub.s32 32, %v941_v63  ;;  %vm312_vm5 = vcmp.lt.s32.totalorder %v943_v0, 1 }
  0xa3   :  { %v298_v7 = vshrl.u32 %v840_v4, %v295_v60  ;;  %v301_v9 = vshrl.u32 %v841_v8, %v295_v60  ;;  %v304_v12 = vshrl.u32 %v842_v11, %v295_v60  ;;  %v307_v16 = vshrl.u32 %v843_v15, %v295_v60 }
  0xa4   :  { %v310_v21 = vshrl.u32 %v844_v18, %v295_v60  ;;  %vm313_vm6 = vcmp.lt.s32.totalorder %v943_v0, 2  ;;  %v296_v29 = vshrl.u32 %v839_v1, %v295_v60  ;;  %vm315_vm7 = vcmp.lt.s32.totalorder %v943_v0, 4 }
  0xa5   :  { %v299_v22 = vor.u32 %v298_v7, %v297_v3  ;;  %v302_v23 = vor.u32 %v301_v9, %v300_v5  ;;  %v305_v24 = vor.u32 %v304_v12, %v303_v10  ;;  %v308_v27 = vor.u32 %v307_v16, %v306_v14 }
  0xa6   :  { %v311_v28 = vor.u32 %v310_v21, %v309_v17  ;;  %vm314_vm8 = vcmp.lt.s32.totalorder %v943_v0, 3  ;;  %v607_v37 = vshll.u32 %v839_v1, %v941_v63  ;;  %v608_v42 = vshrl.u32 %v840_v4, %v959_v25 }
  0xa7   :  { %v320_v30 = vsel %vm312_vm5, %v299_v22, %v302_v23  ;;  %v324_v31 = vsel %vm312_vm5, %v302_v23, %v305_v24  ;;  %v321_v32 = vsel %vm315_vm7, %v308_v27, 920167782  ;;  %v317_v39 = vsel %vm315_vm7, %v305_v24, 2102212464 }
  0xa8   :  { %v325_v35 = vsel %vm315_vm7, %v311_v28, 1326507024  ;;  %v322_v40 = vsel %vm314_vm8, %v305_v24, %v321_v32  ;;  %v610_v45 = vshll.u32 %v840_v4, %v941_v63  ;;  %v611_v46 = vshrl.u32 %v841_v8, %v959_v25 }
  0xa9   :  { %v326_v41 = vsel %vm314_vm8, %v308_v27, %v325_v35  ;;  %v323_v43 = vsel %vm313_vm6, %v320_v30, %v322_v40  ;;  %v316_v51 = vsel %vm312_vm5, %v296_v29, %v299_v22  ;;  %v318_v52 = vsel %vm314_vm8, %v302_v23, %v317_v39 }
  0xaa   :  { %v327_v44 = vsel %vm313_vm6, %v324_v31, %v326_v41  ;;  %v353_v49 = vand.u32 65535, %v323_v43  ;;  %v354_v50 = vshrl.u32 %v323_v43, 16  ;;  %v992_v55 = vor.u32 %v608_v42, %v607_v37 }
  0xab   :  { %v331_v47 = vand.u32 65535, %v327_v44  ;;  %v332_v48 = vshrl.u32 %v327_v44, 16  ;;  %v996_v3 = vor.u32 %v611_v46, %v610_v45  ;;  %v614_v5 = vshrl.u32 %v842_v11, %v959_v25 }
  0xac   :  { %v356_v9 = vmul.u32 %v354_v50, %v936_v61  ;;  %v357_v10 = vmul.u32 %v353_v49, %v939_v62  ;;  %v613_v58 = vshll.u32 %v841_v8, %v941_v63  ;;  %v355_v16 = vmul.u32 %v353_v49, %v936_v61 }
  0xad   :  { %v334_v57 = vmul.u32 %v332_v48, %v936_v61  ;;  %v335_v60 = vmul.u32 %v331_v47, %v939_v62  ;;  %v333_v7 = vmul.u32 %v331_v47, %v936_v61  ;;  %v336_v12 = vmul.u32 %v332_v48, %v939_v62 }
  0xae   :  { %v358_v17 = vmul.u32 %v354_v50, %v939_v62  ;;  %v359_v24 = vshll.u32 %v356_v9, 16  ;;  %v361_v28 = vshll.u32 %v357_v10, 16  ;;  %v1008_v29 = vor.u32 %v614_v5, %v613_v58 }
  0xaf   :  { %v337_v14 = vshll.u32 %v334_v57, 16  ;;  %v338_v21 = vshrl.u32 %v334_v57, 16  ;;  %v339_v22 = vshll.u32 %v335_v60, 16  ;;  %v340_v23 = vshrl.u32 %v335_v60, 16 }
  0xb0   :  { %vm363_vm10 = vc.u32 %v355_v16, %v359_v24  ;;  %v365_v31 = vadd.s32 %v359_v24, %v355_v16  ;;  %v617_v32 = vshrl.u32 %v843_v15, %v959_v25  ;;  %v616_v62 = vshll.u32 %v842_v11, %v941_v63 }
  0xb1   :  { %vm341_vm9 = vc.u32 %v333_v7, %v337_v14  ;;  %v343_v27 = vadd.s32 %v337_v14, %v333_v7  ;;  %v364_v61 = vsel %vm363_vm10, 1, %v835_v2  ;;  %v619_v40 = vshll.u32 %v843_v15, %v941_v63 }
  0xb2   :  { %v342_v30 = vsel %vm341_vm9, 1, %v835_v2  ;;  %v366_v39 = vadd.s32 %v364_v61, %v358_v17  ;;  %vm367_vm12 = vc.u32 %v365_v31, %v361_v28  ;;  %v618_v43 = vor.u32 %v617_v32, %v616_v62 }
  0xb3   :  { %v344_v35 = vadd.s32 %v342_v30, %v336_v12  ;;  %vm345_vm11 = vc.u32 %v343_v27, %v339_v22  ;;  %v368_v42 = vsel %vm367_vm12, 1, %v835_v2  ;;  %v620_v44 = vshrl.u32 %v844_v18, %v959_v25 }
  0xb4   :  { %v346_v37 = vsel %vm345_vm11, 1, %v835_v2  ;;  %v360_v45 = vshrl.u32 %v356_v9, 16  ;;  %v362_v46 = vshrl.u32 %v357_v10, 16  ;;  %v1022_v47 = vadd.s32 %v365_v31, %v361_v28 }
  0xb5   :  { %v348_v41 = vadd.s32 %v346_v37, %v344_v35  ;;  %v370_v48 = vadd.s32 %v368_v42, %v366_v39  ;;  %v621_v50 = vor.u32 %v620_v44, %v619_v40  ;;  %vm622_vm13 = vcmp.lt.s32.totalorder %v990_v53, 1 }
  0xb6   :  { %vm625_vm14 = vcmp.lt.s32.totalorder %v990_v53, 4  ;;  %vm624_vm15 = vcmp.lt.s32.totalorder %v990_v53, 3  ;;  %v630_v63 = vsel %vm622_vm13, %v992_v55, %v996_v3  ;;  %vm623_vm0 = vcmp.lt.s32.totalorder %v990_v53, 2 }
  0xb7   :  { %v349_v49 = vadd.s32 %v348_v41, %v338_v21  ;;  %v371_v57 = vadd.s32 %v370_v48, %v360_v45  ;;  %v631_v60 = vsel %vm625_vm14, %v618_v43, 920167782  ;;  %v634_v9 = vsel %vm622_vm13, %v996_v3, %v1008_v29 }
  0xb8   :  { %v632_v7 = vsel %vm624_vm15, %v1008_v29, %v631_v60  ;;  %v319_v10 = vsel %vm313_vm6, %v316_v51, %v318_v52  ;;  %v635_v14 = vsel %vm625_vm14, %v621_v50, 1326507024  ;;  %v640_v17 = vshrl.u32 %v930_v56, 16 }
  0xb9   :  { %v1033_v5 = vadd.s32 %v349_v49, %v340_v23  ;;  %v372_v58 = vadd.s32 %v371_v57, %v362_v46  ;;  %v633_v12 = vsel %vm623_vm0, %v630_v63, %v632_v7  ;;  %v636_v16 = vsel %vm624_vm15, %v618_v43, %v635_v14 }
  0xba   :  { %v663_v21 = vand.u32 65535, %v633_v12  ;;  %v637_v0 = vsel %vm623_vm0, %v634_v9, %v636_v16  ;;  %v664_v51 = vshrl.u32 %v633_v12, 16  ;;  %v128_v52 = vand.u32 2139095040, %v933_v59 }
  0xbb   :  { %vm375_vm3 = vc.u32 %v1033_v5, %v1022_v47  ;;  %v376_v22 = vadd.s32 1, %v372_v58  ;;  %v373_v23 = vmul.u32 %v928_v54, %v319_v10  ;;  %v641_v24 = vand.u32 65535, %v637_v0 }
  0xbc   :  { %v642_v27 = vshrl.u32 %v637_v0, 16  ;;  %v666_v30 = vmul.u32 %v664_v51, %v948_v6  ;;  %v667_v31 = vmul.u32 %v663_v21, %v640_v17  ;;  %v665_v62 = vmul.u32 %v663_v21, %v948_v6 }
  0xbd   :  { %v377_v28 = vsel %vm375_vm3, %v376_v22, %v372_v58  ;;  %v645_v61 = vmul.u32 %v641_v24, %v640_v17  ;;  %v668_v37 = vmul.u32 %v664_v51, %v640_v17  ;;  %v129_v40 = vshrl.u32 %v128_v52, 23 }
  0xbe   :  { %v378_v32 = vadd.s32 %v377_v28, %v373_v23  ;;  %v644_v35 = vmul.u32 %v642_v27, %v948_v6  ;;  %v669_v39 = vshll.u32 %v666_v30, 16  ;;  %v643_v42 = vmul.u32 %v641_v24, %v948_v6 }
  0xbf   :  { %v646_v43 = vmul.u32 %v642_v27, %v640_v17  ;;  %v649_v44 = vshll.u32 %v645_v61, 16  ;;  %v671_v45 = vshll.u32 %v667_v31, 16  ;;  %v627_v6 = vsel %vm625_vm14, %v1008_v29, 2102212464 }
  0xc0   :  { %v379_v41 = vadd.s32 536870912, %v378_v32  ;;  %v647_v54 = vshll.u32 %v644_v35, 16  ;;  %vm673_vm4 = vc.u32 %v665_v62, %v669_v39  ;;  %v675_v46 = vadd.s32 %v669_v39, %v665_v62 }
  0xc1   :  { %v674_v50 = vsel %vm673_vm4, 1, %v835_v2  ;;  %v606_v9 = vshrl.u32 %v839_v1, %v959_v25  ;;  %v771_v12 = vadd.s32 4294967169, %v129_v40  ;;  %v648_v16 = vshrl.u32 %v644_v35, 16 }
  0xc2   :  { %v1062_v48 = vshrl.u32 %v379_v41, 30  ;;  %vm651_vm5 = vc.u32 %v643_v42, %v647_v54  ;;  %v653_v49 = vadd.s32 %v647_v54, %v643_v42  ;;  %v676_v63 = vadd.s32 %v674_v50, %v668_v37 }
  0xc3   :  { %v652_v57 = vsel %vm651_vm5, 1, %v835_v2  ;;  %vm677_vm6 = vc.u32 %v675_v46, %v671_v45  ;;  %v626_v22 = vsel %vm622_vm13, %v606_v9, %v992_v55  ;;  %v628_v29 = vsel %vm624_vm15, %v996_v3, %v627_v6 }
  0xc4   :  { %v381_v60 = vshll.u32 %v1062_v48, 30  ;;  %v654_v7 = vadd.s32 %v652_v57, %v646_v43  ;;  %vm655_vm7 = vc.u32 %v653_v49, %v649_v44  ;;  %v678_v58 = vsel %vm677_vm6, 1, %v835_v2 }
  0xc5   :  { %v656_v10 = vsel %vm655_vm7, 1, %v835_v2  ;;  %v680_v21 = vadd.s32 %v678_v58, %v676_v63  ;;  %v670_v0 = vshrl.u32 %v666_v30, 16  ;;  %v135_v25 = vadd.s32 1, %v771_v12 }
  0xc6   :  { %v1074_v14 = vsub.s32 %v378_v32, %v381_v60  ;;  %v658_v17 = vadd.s32 %v656_v10, %v654_v7  ;;  %v650_v52 = vshrl.u32 %v645_v61, 16  ;;  %v672_v24 = vshrl.u32 %v667_v31, 16 }
  0xc7   :  { %v681_v27 = vadd.s32 %v680_v21, %v670_v0  ;;  %vm136_vm9 = vcmp.gt.s32.totalorder %v135_v25, 0  ;;  %v629_v55 = vsel %vm623_vm0, %v626_v22, %v628_v29  ;;  %v1089_v30 = vadd.s32 %v675_v46, %v671_v45 }
  0xc8   :  { %vm383_vm8 = vcmp.lt.s32.totalorder %v1074_v14, 0  ;;  %v384_v51 = vsub.s32 0, %v1074_v14  ;;  %v659_v23 = vadd.s32 %v658_v17, %v648_v16  ;;  %v137_v35 = vsel %vm136_vm9, %v135_v25, 0 }
  0xc9   :  { %v682_v62 = vadd.s32 %v681_v27, %v672_v24  ;;  %v139_v37 = vand.u32 31, %v137_v35  ;;  %v125_v39 = vand.u32 2147483647, %v933_v59  ;;  %v683_v53 = vmul.u32 %v930_v56, %v629_v55 }
  0xca   :  { %v385_v28 = vsel %vm383_vm8, %v384_v51, %v1074_v14  ;;  %v1087_v32 = vadd.s32 %v659_v23, %v650_v52  ;;  %v1109_v60 = vshrl.u32 %v137_v35, 5  ;;  %v374_v51 = vadd.s32 %v1022_v47, %v1033_v5 }
  0xcb   :  { %v386_v3 = vclz %v385_v28  ;;  %v686_v31 = vadd.s32 1, %v682_v62  ;;  %v1094_v40 = vsub.s32 32, %v139_v37  ;;  %v132_v45 = vand.u32 8388607, %v125_v39 }
  0xcc   :  { %vm685_vm10 = vc.u32 %v1087_v32, %v1089_v30  ;;  %v142_v56 = vshll.u32 %v839_v1, %v139_v37  ;;  %v151_v57 = vshll.u32 %v842_v11, %v139_v37  ;;  %v145_v6 = vshll.u32 %v840_v4, %v139_v37 }
  0xcd   :  { %v775_v61 = vadd.s32 4294967294, %v386_v3  ;;  %v687_v41 = vsel %vm685_vm10, %v686_v31, %v682_v62  ;;  %v143_v54 = vshrl.u32 %v840_v4, %v1094_v40  ;;  %v146_v46 = vshrl.u32 %v841_v8, %v1094_v40 }
  0xce   :  { %v688_v43 = vadd.s32 %v687_v41, %v683_v53  ;;  %v149_v49 = vshrl.u32 %v842_v11, %v1094_v40  ;;  %v152_v63 = vshrl.u32 %v843_v15, %v1094_v40  ;;  %v148_v7 = vshll.u32 %v841_v8, %v139_v37 }
  0xcf   :  { %vm776_vm11 = vcmp.lt.s32.totalorder %v775_v61, 0  ;;  %v155_v9 = vshrl.u32 %v844_v18, %v1094_v40  ;;  %v1117_v58 = vor.u32 %v143_v54, %v142_v56  ;;  %v1119_v17 = vor.u32 %v146_v46, %v145_v6 }
  0xd0   :  { %v389_v42 = vsel %vm776_vm11, 0, %v775_v61  ;;  %v689_v50 = vadd.s32 536870912, %v688_v43  ;;  %v153_v12 = vor.u32 %v152_v63, %v151_v57  ;;  %v1121_v21 = vor.u32 %v149_v49, %v148_v7 }
  0xd1   :  { %v394_v44 = vsub.s32 4294967266, %v389_v42  ;;  %v154_v22 = vshll.u32 %v843_v15, %v139_v37  ;;  %v390_v29 = vsub.s32 32, %v389_v42  ;;  %v133_v25 = vor.u32 8388608, %v132_v45 }
  0xd2   :  { %v1115_v10 = vshrl.u32 %v689_v50, 30  ;;  %vm160_vm12 = vcmp.lt.s32.totalorder %v1109_v60, 4  ;;  %vm157_vm13 = vcmp.lt.s32.totalorder %v1109_v60, 1  ;;  %vm159_vm14 = vcmp.lt.s32.totalorder %v1109_v60, 3 }
  0xd3   :  { %v395_v16 = vadd.s32 127, %v394_v44  ;;  %v156_v52 = vor.u32 %v155_v9, %v154_v22  ;;  %v166_v24 = vsel %vm160_vm12, %v153_v12, 920167782  ;;  %v165_v28 = vsel %vm157_vm13, %v1117_v58, %v1119_v17 }
  0xd4   :  { %v691_v0 = vshll.u32 %v1115_v10, 30  ;;  %v167_v47 = vsel %vm159_vm14, %v1121_v21, %v166_v24  ;;  %v392_v5 = vshrl.u32 %v374_v51, %v390_v29  ;;  %v1139_v35 = vshll.u32 %v133_v25, 8 }
  0xd5   :  { %v396_v27 = vshll.u32 %v395_v16, 23  ;;  %vm158_vm0 = vcmp.lt.s32.totalorder %v1109_v60, 2  ;;  %v169_v3 = vsel %vm157_vm13, %v1119_v17, %v1121_v21  ;;  %v170_v62 = vsel %vm160_vm12, %v156_v52, 1326507024 }
  0xd6   :  { %v692_v23 = vsub.s32 %v688_v43, %v691_v0  ;;  %v391_v37 = vshll.u32 %v1074_v14, %v389_v42  ;;  %v168_v31 = vsel %vm158_vm0, %v165_v28, %v167_v47  ;;  %v171_v53 = vsel %vm159_vm14, %v153_v12, %v170_v62 }
  0xd7   :  { %v397_v41 = vor.u32 4788187, %v396_v27  ;;  %v172_v54 = vsel %vm158_vm0, %v169_v3, %v171_v53  ;;  %v174_v45 = vand.u32 65535, %v1139_v35  ;;  %v175_v50 = vshrl.u32 %v1139_v35, 16 }
  0xd8   :  { %vm693_vm15 = vcmp.lt.s32.totalorder %v692_v23, 0  ;;  %v694_v55 = vsub.s32 0, %v692_v23  ;;  %v393_v44 = vor.u32 %v392_v5, %v391_v37  ;;  %v176_v46 = vand.u32 65535, %v172_v54 }
  0xd9   :  { %v177_v14 = vshrl.u32 %v172_v54, 16  ;;  %v199_v42 = vshrl.u32 %v168_v31, 16  ;;  %v398_v56 = vand.u32 2147483647, %v397_v41  ;;  %v684_v6 = vadd.s32 %v1089_v30, %v1087_v32 }
  0xda   :  { %v695_v61 = vsel %vm693_vm15, %v694_v55, %v692_v23  ;;  %v180_v63 = vmul.u32 %v176_v46, %v175_v50  ;;  %v400_v9 = vcvt.s32.f32 %v393_v44  ;;  %v198_v16 = vand.u32 65535, %v168_v31 }
  0xdb   :  { %v696_v43 = vclz %v695_v61  ;;  %v179_v57 = vmul.u32 %v177_v14, %v174_v45  ;;  %v201_v22 = vmul.u32 %v199_v42, %v174_v45  ;;  %vm282_vm4 = vcmp.lt.s32.totalorder %v911_v33, 0 }
  0xdc   :  { %v178_v0 = vmul.u32 %v176_v46, %v174_v45  ;;  %v401_v51 = vmul.f32 %v400_v9, %v398_v56  ;;  %v181_v24 = vmul.u32 %v177_v14, %v175_v50  ;;  %v184_v27 = vshll.u32 %v180_v63, 16 }
  0xdd   :  { %v781_v49 = vadd.s32 4294967294, %v696_v43  ;;  %v182_v25 = vshll.u32 %v179_v57, 16  ;;  %vm1162_vm6 = vcmp.le.f32.partialorder %v280_v36, 0.7853982  ;;  %v202_v55 = vmul.u32 %v198_v16, %v175_v50 }
  0xde   :  { %v204_v3 = vshll.u32 %v201_v22, 16  ;;  %v402_v31 = vxor.u32 2147483648, %v401_v51  ;;  %v200_v41 = vmul.u32 %v198_v16, %v174_v45  ;;  %v162_v36 = vsel %vm160_vm12, %v1121_v21, 2102212464 }
  0xdf   :  { %vm782_vm3 = vcmp.lt.s32.totalorder %v781_v49, 0  ;;  %vm186_vm5 = vc.u32 %v178_v0, %v182_v25  ;;  %v188_v5 = vadd.s32 %v182_v25, %v178_v0  ;;  %v183_v54 = vshrl.u32 %v179_v57, 16 }
  0xe0   :  { %v699_v7 = vsel %vm782_vm3, 0, %v781_v49  ;;  %v187_v30 = vsel %vm186_vm5, 1, %v835_v2  ;;  %v203_v46 = vmul.u32 %v199_v42, %v175_v50  ;;  %v206_v49 = vshll.u32 %v202_v55, 16 }
  0xe1   :  { %v700_v12 = vsub.s32 32, %v699_v7  ;;  %v704_v29 = vsub.s32 4294967266, %v699_v7  ;;  %v701_v28 = vshll.u32 %v692_v23, %v699_v7  ;;  %v189_v61 = vadd.s32 %v187_v30, %v181_v24 }
  0xe2   :  { %vm190_vm7 = vc.u32 %v188_v5, %v184_v27  ;;  %v141_v23 = vshrl.u32 %v839_v1, %v1094_v40  ;;  %vm208_vm8 = vc.u32 %v200_v41, %v204_v3  ;;  %v210_v14 = vadd.s32 %v204_v3, %v200_v41  ;;  %v84_v40 = vpop.permute.xlu1 %83 }
  0xe3   :  { %v702_v52 = vshrl.u32 %v684_v6, %v700_v12  ;;  %v705_v47 = vadd.s32 127, %v704_v29  ;;  %v191_v53 = vsel %vm190_vm7, 1, %v835_v2  ;;  %v209_v9 = vsel %vm208_vm8, 1, %v835_v2 }
  0xe4   :  { %v193_v44 = vadd.s32 %v191_v53, %v189_v61  ;;  %v403_v45 = vsel %vm282_vm4, %v402_v31, %v401_v51  ;;  %v211_v12 = vadd.s32 %v209_v9, %v203_v46  ;;  %vm212_vm9 = vc.u32 %v210_v14, %v206_v49 }
  0xe5   :  { %v703_v62 = vor.u32 %v702_v52, %v701_v28  ;;  %v706_v37 = vshll.u32 %v705_v47, 23  ;;  %v98_v21 = vsel %vm95_vm2, %v890_v19, %v887_v13  ;;  %v161_v50 = vsel %vm157_vm13, %v141_v23, %v1117_v58 }
  0xe6   :  { %v194_v7 = vadd.s32 %v193_v44, %v183_v54  ;;  %v185_v42 = vshrl.u32 %v180_v63, 16  ;;  %v213_v16 = vsel %vm212_vm9, 1, %v835_v2  ;;  %v163_v29 = vsel %vm159_vm14, %v1119_v17, %v162_v36 }
  0xe7   :  { %v707_v43 = vor.u32 4788187, %v706_v37  ;;  %v710_v6 = vcvt.s32.f32 %v703_v62  ;;  %v205_v0 = vshrl.u32 %v201_v22, 16  ;;  %v215_v25 = vadd.s32 %v213_v16, %v211_v12 }
  0xe8   :  { %v103_v51 = vsel %vm100_vm1, %v98_v21, %v84_v40  ;;  %v1190_v13 = vsel %vm1162_vm6, %v911_v33, %v403_v45  ;;  %v1192_v52 = vadd.s32 %v194_v7, %v185_v42  ;;  %vm592_vm2 = vcmp.lt.s32.totalorder %v914_v34, 0 }
  0xe9   :  { %v708_v56 = vand.u32 2147483647, %v707_v43  ;;  %v111_v58 = vmul.f32 %v895_v20, %v103_v51  ;;  %v714_v63 = vsub.s32 4, %v1115_v10  ;;  %v207_v24 = vshrl.u32 %v202_v55, 16 }
  0xea   :  { %v216_v17 = vadd.s32 %v215_v25, %v205_v0  ;;  %vm1199_vm10 = vcmp.le.f32.partialorder %v590_v38, 0.7853982  ;;  %v1203_v28 = vadd.s32 %v210_v14, %v206_v49  ;;  %v1210_v20 = vmul.f32 %v1190_v13, %v1190_v13 }
  0xeb   :  { %v711_v57 = vmul.f32 %v710_v6, %v708_v56  ;;  %v1206_v47 = vadd.f32 %v902_v26, %v111_v58  ;;  %v164_v38 = vsel %vm158_vm0, %v161_v50, %v163_v29  ;;  %v715_v3 = vsel %vm592_vm2, %v714_v63, %v1115_v10 }
  0xec   :  { %v217_v30 = vadd.s32 %v216_v17, %v207_v24  ;;  %vm220_vm1 = vc.u32 %v1192_v52, %v1203_v28  ;;  %v404_v37 = vsub.s32 4, %v1062_v48  ;;  %v218_v23 = vmul.u32 %v1139_v35, %v164_v38 }
  0xed   :  { %v712_v19 = vxor.u32 2147483648, %v711_v57  ;;  %v438_v62 = vand.u32 2139095040, %v1206_v47  ;;  %v409_v53 = vmul.f32 -0.001358992, %v1210_v20  ;;  %v416_v60 = vmul.f32 -0.00019511016, %v1210_v20 }
  0xee   :  { %v221_v26 = vadd.s32 1, %v217_v30  ;;  %v717_v36 = vsel %vm1199_vm10, 0, %v715_v3  ;;  %v405_v49 = vsel %vm282_vm4, %v404_v37, %v1062_v48  ;;  %vm733_vm12 = vweird.f32 %v914_v34 }
  0xef   :  { %v713_v27 = vsel %vm592_vm2, %v712_v19, %v711_v57  ;;  %v439_v43 = vshrl.u32 %v438_v62, 23  ;;  %v410_v6 = vadd.f32 0.041655596, %v409_v53  ;;  %v417_v7 = vadd.f32 0.008332121, %v416_v60 }
  0xf0   :  { %v716_v5 = vsel %vm1199_vm10, %v914_v34, %v713_v27  ;;  %v222_v41 = vsel %vm220_vm1, %v221_v26, %v217_v30  ;;  %v734_v9 = vadd.s32 3, %v717_v36  ;;  %v435_v57 = vand.u32 2147483647, %v1206_v47 }
  0xf1   :  { %v718_v55 = vmul.f32 %v716_v5, %v716_v5  ;;  %v223_v44 = vadd.s32 %v222_v41, %v218_v23  ;;  %v777_v46 = vadd.s32 4294967169, %v439_v43  ;;  %v407_v50 = vsel %vm1162_vm6, 0, %v405_v49 }
  0xf2   :  { %v411_v29 = vmul.f32 %v410_v6, %v1210_v20  ;;  %v735_v0 = vand.u32 3, %v734_v9  ;;  %v418_v51 = vmul.f32 %v417_v7, %v1210_v20  ;;  %v1238_v24 = vadd.s32 3, %v407_v50 }
  0xf3   :  { %v719_v61 = vmul.f32 -0.001358992, %v718_v55  ;;  %v726_v31 = vmul.f32 -0.00019511016, %v718_v55  ;;  %v224_v35 = vadd.s32 536870912, %v223_v44  ;;  %v445_v40 = vadd.s32 1, %v777_v46 }
  0xf4   :  { %v442_v32 = vand.u32 8388607, %v435_v57  ;;  %vm736_vm14 = vcmp.lt.s32.totalorder %v735_v0, 2  ;;  %vm737_vm15 = vcmp.eq.s32.totalorder %v735_v0, 0  ;;  %vm740_vm0 = vcmp.eq.s32.totalorder %v735_v0, 2 }
  0xf5   :  { %v720_v54 = vadd.f32 0.041655596, %v719_v61  ;;  %v727_v10 = vadd.f32 0.008332121, %v726_v31  ;;  %v1230_v21 = vshrl.u32 %v224_v35, 30  ;;  %vm446_vm11 = vcmp.gt.s32.totalorder %v445_v40, 0 }
  0xf6   :  { %v447_v25 = vsel %vm446_vm11, %v445_v40, 0  ;;  %v419_v3 = vadd.f32 -0.16666654, %v418_v51  ;;  %v219_v37 = vadd.s32 %v1203_v28, %v1192_v52  ;;  %v443_v31 = vor.u32 8388608, %v442_v32 }
  0xf7   :  { %v721_v14 = vmul.f32 %v720_v54, %v718_v55  ;;  %v728_v56 = vmul.f32 %v727_v10, %v718_v55  ;;  %v226_v48 = vshll.u32 %v1230_v21, 30  ;;  %v449_v17 = vand.u32 31, %v447_v25 }
  0xf8   :  { %v1249_v41 = vshrl.u32 %v447_v25, 5  ;;  %vm127_vm4 = vcmp.lt.s32.totalorder %v933_v59, 0  ;;  %v1270_v50 = vshll.u32 %v443_v31, 8  ;;  %vm1293_vm9 = vcmp.le.f32.partialorder %v125_v39, 0.7853982 }
  0xf9   :  { %v722_v45 = vadd.f32 -0.4999988, %v721_v14  ;;  %v729_v12 = vadd.f32 -0.16666654, %v728_v56  ;;  %v227_v63 = vsub.s32 %v223_v44, %v226_v48  ;;  %v450_v30 = vsub.s32 32, %v449_v17 }
  0xfa   :  { %v452_v10 = vshll.u32 %v839_v1, %v449_v17  ;;  %v455_v44 = vshll.u32 %v840_v4, %v449_v17  ;;  %v458_v46 = vshll.u32 %v841_v8, %v449_v17  ;;  %v461_v49 = vshll.u32 %v842_v11, %v449_v17 }
  0xfb   :  { %v723_v42 = vmul.f32 %v722_v45, %v718_v55  ;;  %v730_v16 = vmul.f32 %v729_v12, %v718_v55  ;;  %vm228_vm13 = vcmp.lt.s32.totalorder %v227_v63, 0  ;;  %v229_v38 = vsub.s32 0, %v227_v63 }
  0xfc   :  { %v412_v55 = vadd.f32 -0.4999988, %v411_v29  ;;  %v453_v23 = vshrl.u32 %v840_v4, %v450_v30  ;;  %v456_v43 = vshrl.u32 %v841_v8, %v450_v30  ;;  %v459_v52 = vshrl.u32 %v842_v11, %v450_v30 }
  0xfd   :  { %v724_v19 = vadd.f32 1.0, %v723_v42  ;;  %v731_v58 = vadd.f32 1.0, %v730_v16  ;;  %v230_v62 = vsel %vm228_vm13, %v229_v38, %v227_v63  ;;  %v462_v35 = vshrl.u32 %v843_v15, %v450_v30 }
  0xfe   :  { %v231_v61 = vclz %v230_v62  ;;  %v454_v56 = vor.u32 %v453_v23, %v452_v10  ;;  %v1261_v7 = vor.u32 %v456_v43, %v455_v44  ;;  %v464_v9 = vshll.u32 %v843_v15, %v449_v17 }
  0xff   :  { %v732_v22 = vmul.f32 %v731_v58, %v716_v5  ;;  %v741_v27 = vxor.u32 2147483648, %v724_v19  ;;  %v124_v5 = vld [vmem:[%s1350_s0 + $0x18] sm:$0xff]  ;;  %v465_v40 = vshrl.u32 %v844_v18, %v450_v30  ;;  %v460_v8 = vor.u32 %v459_v52, %v458_v46 }
 0x100   :  { %v772_v54 = vadd.s32 4294967294, %v231_v61  ;;  %v463_v45 = vor.u32 %v462_v35, %v461_v49  ;;  %v1267_v11 = vmul.f32 %v412_v55, %v1210_v20  ;;  %vm467_vm5 = vcmp.lt.s32.totalorder %v1249_v41, 1 }
 0x101   :  { %v738_v26 = vxor.u32 2147483648, %v732_v22  ;;  %v742_v60 = vsel %vm740_vm0, %v741_v27, %v732_v22  ;;  %v466_v12 = vor.u32 %v465_v40, %v464_v9  ;;  %vm470_vm6 = vcmp.lt.s32.totalorder %v1249_v41, 4 }
 0x102   :  { %vm773_vm3 = vcmp.lt.s32.totalorder %v772_v54, 0  ;;  %vm468_vm7 = vcmp.lt.s32.totalorder %v1249_v41, 2  ;;  %vm469_vm8 = vcmp.lt.s32.totalorder %v1249_v41, 3  ;;  %v475_v18 = vsel %vm467_vm5, %v454_v56, %v1261_v7 }
 0x103   :  { %v739_v53 = vsel %vm737_vm15, %v724_v19, %v738_v26  ;;  %v234_v6 = vsel %vm773_vm3, 0, %v772_v54  ;;  %v476_v48 = vsel %vm470_vm6, %v463_v45, 920167782  ;;  %v479_v51 = vsel %vm467_vm5, %v1261_v7, %v460_v8 }
 0x104   :  { %v743_v36 = vsel %vm736_vm14, %v739_v53, %v742_v60  ;;  %v235_v34 = vsub.s32 32, %v234_v6  ;;  %v239_v4 = vsub.s32 4294967266, %v234_v6  ;;  %v236_v42 = vshll.u32 %v227_v63, %v234_v6 }
 0x105   :  { %v744_v28 = vsel %vm733_vm12, nan, %v743_v36  ;;  %v477_v25 = vsel %vm469_vm8, %v460_v8, %v476_v48  ;;  %v420_v19 = vmul.f32 %v419_v3, %v1210_v20  ;;  %v249_v58 = vsub.s32 4, %v1230_v21 }
 0x106   :  { %v748_v14 = vadd.f32 %v744_v28, %v124_v5  ;;  %v237_v16 = vshrl.u32 %v219_v37, %v235_v34  ;;  %v240_v15 = vadd.s32 127, %v239_v4  ;;  %v478_v63 = vsel %vm468_vm7, %v475_v18, %v477_v25 }
 0x107   :  { %v480_v32 = vsel %vm470_vm6, %v466_v12, 1326507024  ;;  %v484_v20 = vand.u32 65535, %v1270_v50  ;;  %v508_v38 = vand.u32 65535, %v478_v63  ;;  %v451_v55 = vshrl.u32 %v839_v1, %v450_v30 }
 0x108   :  { %752 = vst [vmem:[#allocation2 + $0x18] sm:$0xff] %v748_v14  ;;  %v238_v29 = vor.u32 %v237_v16, %v236_v42  ;;  %v241_v0 = vshll.u32 %v240_v15, 23  ;;  %v481_v27 = vsel %vm469_vm8, %v463_v45, %v480_v32  ;;  %v485_v26 = vshrl.u32 %v1270_v50, 16 }
 0x109   :  { %v482_v3 = vsel %vm468_vm7, %v479_v51, %v481_v27  ;;  %v509_v62 = vshrl.u32 %v478_v63, 16  ;;  %v421_v23 = vadd.f32 1.0, %v420_v19  ;;  %v250_v5 = vsel %vm127_vm4, %v249_v58, %v1230_v21 }
 0x10a   :  { %v242_v22 = vor.u32 4788187, %v241_v0  ;;  %v245_v39 = vcvt.s32.f32 %v238_v29  ;;  %v486_v61 = vand.u32 65535, %v482_v3  ;;  %v487_v31 = vshrl.u32 %v482_v3, 16 }
 0x10b   :  { %v511_v53 = vmul.u32 %v509_v62, %v484_v20  ;;  %v512_v60 = vmul.u32 %v508_v38, %v485_v26  ;;  %v471_v1 = vsel %vm467_vm5, %v451_v55, %v454_v56  ;;  %v472_v54 = vsel %vm470_vm6, %v460_v8, 2102212464 }
 0x10c   :  { %v243_v37 = vand.u32 2147483647, %v242_v22  ;;  %v489_v30 = vmul.u32 %v487_v31, %v484_v20  ;;  %v490_v36 = vmul.u32 %v486_v61, %v485_v26  ;;  %v510_v10 = vmul.u32 %v508_v38, %v484_v20 }
 0x10d   :  { %v513_v52 = vmul.u32 %v509_v62, %v485_v26  ;;  %v514_v28 = vshll.u32 %v511_v53, 16  ;;  %v488_v46 = vmul.u32 %v486_v61, %v484_v20  ;;  %v491_v49 = vmul.u32 %v487_v31, %v485_v26 }
 0x10e   :  { %v246_v43 = vmul.f32 %v245_v39, %v243_v37  ;;  %v492_v14 = vshll.u32 %v489_v30, 16  ;;  %v494_v35 = vshll.u32 %v490_v36, 16  ;;  %v516_v21 = vshll.u32 %v512_v60, 16 }
 0x10f   :  { %vm518_vm2 = vc.u32 %v510_v10, %v514_v28  ;;  %v520_v6 = vadd.s32 %v514_v28, %v510_v10  ;;  %v473_v16 = vsel %vm469_vm8, %v1261_v7, %v472_v54  ;;  %v515_v18 = vshrl.u32 %v511_v53, 16 }
 0x110   :  { %v247_v44 = vxor.u32 2147483648, %v246_v43  ;;  %vm496_vm10 = vc.u32 %v488_v46, %v492_v14  ;;  %v498_v56 = vadd.s32 %v492_v14, %v488_v46  ;;  %v519_v40 = vsel %vm518_vm2, 1, %v835_v2 }
 0x111   :  { %v497_v4 = vsel %vm496_vm10, 1, %v835_v2  ;;  %v521_v8 = vadd.s32 %v519_v40, %v513_v52  ;;  %vm522_vm1 = vc.u32 %v520_v6, %v516_v21  ;;  %v493_v25 = vshrl.u32 %v489_v30, 16 }
 0x112   :  { %v248_v9 = vsel %vm127_vm4, %v247_v44, %v246_v43  ;;  %v499_v12 = vadd.s32 %v497_v4, %v491_v49  ;;  %vm500_vm11 = vc.u32 %v498_v56, %v494_v35  ;;  %v523_v42 = vsel %vm522_vm1, 1, %v835_v2  ;;  %v121_v35 = vld [vmem:[%s1350_s0] sm:$0xff] }
 0x113   :  { %v251_v34 = vsel %vm1293_vm9, %v933_v59, %v248_v9  ;;  %v501_v15 = vsel %vm500_vm11, 1, %v835_v2  ;;  %v525_v48 = vadd.s32 %v523_v42, %v521_v8  ;;  %v422_v19 = vmul.f32 %v421_v23, %v1190_v13 }
 0x114   :  { %v253_v45 = vmul.f32 %v251_v34, %v251_v34  ;;  %v503_v51 = vadd.s32 %v501_v15, %v499_v12  ;;  %v425_v58 = vand.u32 3, %v1238_v24  ;;  %v517_v63 = vshrl.u32 %v512_v60, 16 }
 0x115   :  { %v526_v32 = vadd.s32 %v525_v48, %v515_v18  ;;  %v495_v20 = vshrl.u32 %v490_v36, 16  ;;  %v414_v7 = vadd.f32 1.0, %v1267_v11  ;;  %v252_v2 = vsel %vm1293_vm9, 0, %v250_v5 }
 0x116   :  { %v254_v29 = vmul.f32 -0.001358992, %v253_v45  ;;  %v261_v0 = vmul.f32 -0.00019511016, %v253_v45  ;;  %v504_v38 = vadd.s32 %v503_v51, %v493_v25  ;;  %v474_v55 = vsel %vm468_vm7, %v471_v1, %v473_v16 }
 0x117   :  { %v527_v3 = vadd.s32 %v526_v32, %v517_v63  ;;  %v524_v37 = vadd.s32 %v520_v6, %v516_v21  ;;  %v428_v24 = vxor.u32 2147483648, %v422_v19  ;;  %v528_v23 = vmul.u32 %v1270_v50, %v474_v55 }
 0x118   :  { %v255_v22 = vadd.f32 0.041655596, %v254_v29  ;;  %v262_v27 = vadd.f32 0.008332121, %v261_v0  ;;  %v505_v13 = vadd.s32 %v504_v38, %v495_v20  ;;  %v431_v53 = vxor.u32 2147483648, %v414_v7 }
 0x119   :  { %v531_v39 = vadd.s32 1, %v527_v3  ;;  %v269_v11 = vadd.s32 3, %v252_v2  ;;  %vm427_vm13 = vcmp.eq.s32.totalorder %v425_v58, 0  ;;  %vm430_vm14 = vcmp.eq.s32.totalorder %v425_v58, 2 }
 0x11a   :  { %v256_v26 = vmul.f32 %v255_v22, %v253_v45  ;;  %v263_v62 = vmul.f32 %v262_v27, %v253_v45  ;;  %vm530_vm12 = vc.u32 %v505_v13, %v524_v37  ;;  %v429_v43 = vsel %vm427_vm13, %v414_v7, %v428_v24 }
 0x11b   :  { %v532_v60 = vsel %vm530_vm12, %v531_v39, %v527_v3  ;;  %vm426_vm15 = vcmp.lt.s32.totalorder %v425_v58, 2  ;;  %v432_v54 = vsel %vm430_vm14, %v431_v53, %v422_v19  ;;  %v270_v10 = vand.u32 3, %v269_v11 }
 0x11c   :  { %v257_v61 = vadd.f32 -0.4999988, %v256_v26  ;;  %v264_v31 = vadd.f32 -0.16666654, %v263_v62  ;;  %v533_v41 = vadd.s32 %v532_v60, %v528_v23  ;;  %v433_v52 = vsel %vm426_vm15, %v429_v43, %v432_v54  ;;  %v123_v43 = vld [vmem:[%s1350_s0 + $0x10] sm:$0xff] }
 0x11d   :  { %vm423_vm0 = vweird.f32 %v911_v33  ;;  %vm272_vm3 = vcmp.eq.s32.totalorder %v270_v10, 0  ;;  %vm275_vm4 = vcmp.eq.s32.totalorder %v270_v10, 2  ;;  %vm271_vm5 = vcmp.lt.s32.totalorder %v270_v10, 2  ;;  %v122_v33 = vld [vmem:[%s1350_s0 + $0x8] sm:$0xff] }
 0x11e   :  { %v258_v17 = vmul.f32 %v257_v61, %v253_v45  ;;  %v265_v5 = vmul.f32 %v264_v31, %v253_v45  ;;  %v534_v36 = vadd.s32 536870912, %v533_v41  ;;  %v434_v14 = vsel %vm423_vm0, nan, %v433_v52 }
 0x11f   :  { %vm268_vm6 = vweird.f32 %v933_v59  ;;  %v746_v8 = vadd.f32 %v434_v14, %v122_v33  ;;  %v529_v15 = vadd.s32 %v524_v37, %v505_v13  ;;  %vm437_vm9 = vcmp.lt.s32.totalorder %v1206_v47, 0 }
 0x120   :  { %v259_v1 = vadd.f32 1.0, %v258_v17  ;;  %v266_v30 = vadd.f32 1.0, %v265_v5  ;;  %v535_v50 = vshrl.u32 %v534_v36, 30  ;;  %vm436_vm2 = vcmp.le.f32.partialorder %v435_v57, 0.7853982 }
 0x121   :  { %750 = vst [vmem:[#allocation2 + $0x8] sm:$0xff] %v746_v8  ;;  %vm578_vm12 = vweird.f32 %v1206_v47 }
 0x122   :  { %v267_v28 = vmul.f32 %v266_v30, %v251_v34  ;;  %v276_v44 = vxor.u32 2147483648, %v259_v1  ;;  %v536_v49 = vshll.u32 %v535_v50, 30  ;;  %v559_v20 = vsub.s32 4, %v535_v50 }
 0x124   :  { %v273_v46 = vxor.u32 2147483648, %v267_v28  ;;  %v277_v6 = vsel %vm275_vm4, %v276_v44, %v267_v28  ;;  %v537_v9 = vsub.s32 %v533_v41, %v536_v49  ;;  %v560_v3 = vsel %vm437_vm9, %v559_v20, %v535_v50 }
 0x125   :  { %v562_v13 = vsel %vm436_vm2, 0, %v560_v3 }
 0x126   :  { %v274_v21 = vsel %vm272_vm3, %v259_v1, %v273_v46  ;;  %vm538_vm7 = vcmp.lt.s32.totalorder %v537_v9, 0  ;;  %v539_v34 = vsub.s32 0, %v537_v9  ;;  %v579_v31 = vadd.s32 3, %v562_v13 }
 0x127   :  { %v278_v56 = vsel %vm271_vm5, %v274_v21, %v277_v6 }
 0x128   :  { %v279_v40 = vsel %vm268_vm6, nan, %v278_v56  ;;  %v540_v45 = vsel %vm538_vm7, %v539_v34, %v537_v9  ;;  %v580_v60 = vand.u32 3, %v579_v31 }
 0x129   :  { %v745_v4 = vadd.f32 %v279_v40, %v121_v35  ;;  %v541_v12 = vclz %v540_v45 }
 0x12a   :  { %vm582_vm10 = vcmp.eq.s32.totalorder %v580_v60, 0  ;;  %vm585_vm1 = vcmp.eq.s32.totalorder %v580_v60, 2  ;;  %vm581_vm11 = vcmp.lt.s32.totalorder %v580_v60, 2 }
 0x12b   :  { %749 = vst [vmem:[#allocation2] sm:$0xff] %v745_v4  ;;  %v778_v42 = vadd.s32 4294967294, %v541_v12 }
 0x12d   :  { %vm779_vm8 = vcmp.lt.s32.totalorder %v778_v42, 0 }
 0x12e   :  { %v544_v16 = vsel %vm779_vm8, 0, %v778_v42 }
 0x12f   :  { %v545_v18 = vsub.s32 32, %v544_v16  ;;  %v549_v59 = vsub.s32 4294967266, %v544_v16  ;;  %v546_v48 = vshll.u32 %v537_v9, %v544_v16 }
 0x131   :  { %v547_v29 = vshrl.u32 %v529_v15, %v545_v18  ;;  %v550_v0 = vadd.s32 127, %v549_v59 }
 0x133   :  { %v548_v25 = vor.u32 %v547_v29, %v546_v48  ;;  %v551_v51 = vshll.u32 %v550_v0, 23 }
 0x135   :  { %v552_v19 = vor.u32 4788187, %v551_v51  ;;  %v555_v63 = vcvt.s32.f32 %v548_v25 }
 0x137   :  { %v553_v58 = vand.u32 2147483647, %v552_v19 }
 0x139   :  { %v556_v32 = vmul.f32 %v555_v63, %v553_v58 }
 0x13b   :  { %v557_v22 = vxor.u32 2147483648, %v556_v32 }
 0x13d   :  { %v558_v27 = vsel %vm437_vm9, %v557_v22, %v556_v32 }
 0x13e   :  { %v561_v38 = vsel %vm436_vm2, %v1206_v47, %v558_v27 }
 0x13f   :  { %v563_v7 = vmul.f32 %v561_v38, %v561_v38 }
 0x141   :  { %v564_v2 = vmul.f32 -0.001358992, %v563_v7  ;;  %v571_v55 = vmul.f32 -0.00019511016, %v563_v7 }
 0x143   :  { %v565_v26 = vadd.f32 0.041655596, %v564_v2  ;;  %v572_v62 = vadd.f32 0.008332121, %v571_v55 }
 0x145   :  { %v566_v37 = vmul.f32 %v565_v26, %v563_v7  ;;  %v573_v24 = vmul.f32 %v572_v62, %v563_v7 }
 0x147   :  { %v567_v39 = vadd.f32 -0.4999988, %v566_v37  ;;  %v574_v61 = vadd.f32 -0.16666654, %v573_v24 }
 0x149   :  { %v568_v23 = vmul.f32 %v567_v39, %v563_v7  ;;  %v575_v53 = vmul.f32 %v574_v61, %v563_v7 }
 0x14b   :  { %v569_v11 = vadd.f32 1.0, %v568_v23  ;;  %v576_v57 = vadd.f32 1.0, %v575_v53 }
 0x14d   :  { %v577_v17 = vmul.f32 %v576_v57, %v561_v38  ;;  %v586_v5 = vxor.u32 2147483648, %v569_v11 }
 0x14f   :  { %v583_v41 = vxor.u32 2147483648, %v577_v17  ;;  %v587_v30 = vsel %vm585_vm1, %v586_v5, %v577_v17 }
 0x151   :  { %v584_v1 = vsel %vm582_vm10, %v569_v11, %v583_v41 }
 0x152   :  { %v588_v36 = vsel %vm581_vm11, %v584_v1, %v587_v30 }
 0x153   :  { %v589_v54 = vsel %vm578_vm12, nan, %v588_v36 }
 0x154   :  { %v747_v10 = vadd.f32 %v589_v54, %v123_v43 }
 0x156   :  { %751 = vst [vmem:[#allocation2 + $0x10] sm:$0xff] %v747_v10 }
 0x157   :  { %765 = dma.vmem_to_hbm [thread:$0]  %s758_s5, 512, %s760_s8, [#allocation3], %s846_s11, %s846_s11, %s847_s12  }
 0x158   :  { %833 = dma.done.wait [#allocation3], 512  }
 0x159   :  { %834 = vsyncadd [#allocation3], 4294966784 }
 0x15a   :  { %770 = vsyncpa [#allocation3], 1 }

</bundles_post_ra>
